<compile_context>
chip_gen: v7x
topology: tpu7x:2x2x1
jax: 0.10.0
libtpu: 0.0.40
codegen_flags: <defaults>
</compile_context>

<pallas_src>
import jax
import jax.numpy as jnp
from jax.experimental import pallas as pl
from jax.experimental.pallas import tpu as pltpu


def _round_up(n, m):
    return ((n + m - 1) // m) * m


# ----------------------------------------------------------------------------- kernel
def classifier_kernel(x_ref, w1_ref, b1_ref, w23_ref, b23_ref, out_ref):
    # Encoder layer 1: bf16 MXU matmul with f32 accumulation; bias + ReLU in f32.
    x = x_ref[...].astype(jnp.bfloat16)            # cast in-kernel (no wrapper copy)
    h = jnp.dot(x, w1_ref[...], preferred_element_type=jnp.float32)
    h = jnp.maximum(h + b1_ref[...], 0.0)
    # Fused [encoder layer 2 @ classifier head]: single MXU matmul.
    out = jnp.dot(h.astype(jnp.bfloat16), w23_ref[...],
                  preferred_element_type=jnp.float32)
    out_ref[...] = (out + b23_ref[...]).astype(out_ref.dtype)


# --------------------------------------------------------------- one-time param prep
def prepare_params(w1, b1, w2, b2, w3, b3, *, hidden_pad_to=128):
    """Fold the two trailing Linears, pad hidden dim, cast weights. Call ONCE.

    Returns (w1_p[bf16], b1_p[f32], w23_p[bf16], b23_p[f32]) ready for the kernel.
    The fold  W23 = W2 @ W3,  b23 = b2 @ W3 + b3  is exact up to fp rounding.
    The hidden zero-pad is exact: ReLU(0) = 0 rows hit zero rows of W23.
    """
    input_size, hidden = w1.shape
    latent = w3.shape[1]

    w23 = w2 @ w3                       # (hidden, latent)
    b23 = b2 @ w3 + b3                  # (1, latent)

    hp = max(hidden, _round_up(hidden, min(hidden_pad_to, 128)))
    w1_p = jnp.zeros((input_size, hp), jnp.bfloat16).at[:, :hidden].set(
        w1.astype(jnp.bfloat16))
    b1_p = jnp.zeros((1, hp), jnp.float32).at[:, :hidden].set(b1)
    w23_p = jnp.zeros((hp, latent), jnp.bfloat16).at[:hidden, :].set(
        w23.astype(jnp.bfloat16))
    b23_p = b23.astype(jnp.float32)
    return w1_p, b1_p, w23_p, b23_p


def _pick_batch_tile(B, input_size, latent, weight_bytes,
                     max_batch_tile=512, vmem_budget=8 << 20):
    """Batch tile: multiple of 8, >=2 grid steps when B>8 (v7x megacore), VMEM-capped."""
    # Double-buffered f32 x tile + double-buffered f32 out tile per row, plus resident
    # weights (counted twice to be conservative about buffering).
    per_row = 2 * 4 * input_size + 2 * 4 * latent
    avail = max(vmem_budget - 2 * weight_bytes, per_row * 8)
    tb = max(8, (avail // per_row) // 8 * 8)
    tb = min(tb, max_batch_tile)
    if B > 8:
        tb = min(tb, _round_up(pl.cdiv(B, 2), 8))   # guarantee >=2 parallel steps
    tb = max(8, min(tb, _round_up(B, 8)))
    return int(tb)


# ------------------------------------------------------------------------- forward
def classifier_forward(x, prepared, *, max_batch_tile=512):
    """forward(x) with pre-prepared params (see prepare_params)."""
    w1_p, b1_p, w23_p, b23_p = prepared
    B, input_size = x.shape
    hp = w1_p.shape[1]
    latent = w23_p.shape[1]

    weight_bytes = (w1_p.size * 2 + b1_p.size * 4 + w23_p.size * 2 + b23_p.size * 4)
    TB = _pick_batch_tile(B, input_size, latent, weight_bytes,
                          max_batch_tile=max_batch_tile)

    grid = (pl.cdiv(B, TB),)                 # ragged last block handled by Pallas
    out = pl.pallas_call(
        classifier_kernel,
        out_shape=jax.ShapeDtypeStruct((B, latent), jnp.float32),
        grid=grid,
        in_specs=[
            pl.BlockSpec((TB, input_size), lambda i: (i, 0)),   # x: streamed over batch
            pl.BlockSpec((input_size, hp), lambda i: (0, 0)),   # w1: resident
            pl.BlockSpec((1, hp), lambda i: (0, 0)),            # b1: resident
            pl.BlockSpec((hp, latent), lambda i: (0, 0)),       # w23: resident
            pl.BlockSpec((1, latent), lambda i: (0, 0)),        # b23: resident
        ],
        out_specs=pl.BlockSpec((TB, latent), lambda i: (i, 0)),
        compiler_params=pltpu.CompilerParams(
            dimension_semantics=("parallel",)),   # megacore sharding on v7x
    )(x, w1_p, b1_p, w23_p, b23_p)
    return out


# ---------------------------------------------------------------------------- init
def init_params(key, input_size, hidden_size, latent_dim):
    """Deterministic (PyTorch-Linear-like uniform) init. Weights are (in, out)."""
    ks = jax.random.split(key, 6)

    def linear(kw, kb, fan_in, fan_out):
        bound = 1.0 / jnp.sqrt(fan_in)
        w = jax.random.uniform(kw, (fan_in, fan_out), jnp.float32, -bound, bound)
        b = jax.random.uniform(kb, (1, fan_out), jnp.float32, -bound, bound)
        return w, b

    w1, b1 = linear(ks[0], ks[1], input_size, hidden_size)
    w2, b2 = linear(ks[2], ks[3], hidden_size, latent_dim)
    w3, b3 = linear(ks[4], ks[5], latent_dim, latent_dim)
    return w1, b1, w2, b2, w3, b3


if __name__ == "__main__":
    # Small shapes consistent with the module's forward (flattened input vectors).
    B = 8            # batch
    input_size = 64  # flattened feature size (X.view(X.shape[0], -1))
    hidden_size = 32
    latent_dim = 16  # encoder.latent_dim == classifier head in/out features

    key = jax.random.PRNGKey(0)
    k_x, k_p = jax.random.split(key)
    x = jax.random.normal(k_x, (B, input_size), jnp.float32)
    params = init_params(k_p, input_size, hidden_size, latent_dim)

    # One-time weight preprocessing (hoisted out of the hot forward path).
    prepared = jax.tree.map(jax.block_until_ready, prepare_params(*params))

    out = classifier_forward(x, prepared)
    out = jax.block_until_ready(out)

    # Pure-JAX f32 reference for correctness (unfused, unpadded).
    w1, b1, w2, b2, w3, b3 = params
    h_ref = jnp.maximum(x @ w1 + b1, 0.0)
    z_ref = h_ref @ w2 + b2
    ref = z_ref @ w3 + b3
    assert out.shape == (B, latent_dim)
    # bf16 matmul operands -> loosened tolerance vs. the f32 reference.
    assert jnp.allclose(out, ref, atol=5e-2, rtol=5e-2), float(
        jnp.max(jnp.abs(out - ref)))

    print("KERNEL_OK")
</pallas_src>

<mosaic_0001>
module attributes {stable_mosaic.version = 11 : i64} {
  func.func @classifier_kernel(%arg0: i32, %arg1: memref<8x64xf32, #tpu.memory_space<vmem>>, %arg2: memref<64x128xbf16, #tpu.memory_space<vmem>>, %arg3: memref<1x128xf32, #tpu.memory_space<vmem>>, %arg4: memref<128x16xbf16, #tpu.memory_space<vmem>>, %arg5: memref<1x16xf32, #tpu.memory_space<vmem>>, %arg6: memref<8x16xf32, #tpu.memory_space<vmem>>) attributes {dimension_semantics = [#tpu.dimension_semantics<parallel>], iteration_bounds = array<i64: 1>, scalar_prefetch = 0 : i64, scratch_operands = 0 : i64, tpu.core_type = #tpu.core_type<tc>, window_params = [{transform_indices = @transform_0, window_bounds = array<i64: 8, 64>}, {pipeline_mode = #tpu.pipeline_mode<synchronous>, transform_indices = @transform_1, window_bounds = array<i64: 64, 128>}, {pipeline_mode = #tpu.pipeline_mode<synchronous>, transform_indices = @transform_2, window_bounds = array<i64: 1, 128>}, {pipeline_mode = #tpu.pipeline_mode<synchronous>, transform_indices = @transform_3, window_bounds = array<i64: 128, 16>}, {pipeline_mode = #tpu.pipeline_mode<synchronous>, transform_indices = @transform_4, window_bounds = array<i64: 1, 16>}, {transform_indices = @transform_5, window_bounds = array<i64: 8, 16>}]} {
    %c0 = arith.constant 0 : index
    %c0_0 = arith.constant 0 : index
    %0 = vector.load %arg1[%c0, %c0_0] : memref<8x64xf32, #tpu.memory_space<vmem>>, vector<8x64xf32>
    %1 = arith.truncf %0 : vector<8x64xf32> to vector<8x64xbf16>
    %c0_1 = arith.constant 0 : index
    %c0_2 = arith.constant 0 : index
    %2 = vector.load %arg2[%c0_1, %c0_2] : memref<64x128xbf16, #tpu.memory_space<vmem>>, vector<64x128xbf16>
    %cst = arith.constant dense<0.000000e+00> : vector<8x128xf32>
    %3 = tpu.matmul %1, %2, %cst {dimension_numbers = #tpu.dot_dimension_numbers<[1], [0], [0], [1], [0, 0, 1, 1], [], []>} : vector<8x64xbf16>, vector<64x128xbf16>, vector<8x128xf32> -> vector<8x128xf32>
    %c0_3 = arith.constant 0 : index
    %c0_4 = arith.constant 0 : index
    %4 = vector.load %arg3[%c0_3, %c0_4] : memref<1x128xf32, #tpu.memory_space<vmem>>, vector<1x128xf32>
    %5 = vector.broadcast %4 : vector<1x128xf32> to vector<8x128xf32>
    %6 = arith.addf %3, %5 : vector<8x128xf32>
    %cst_5 = arith.constant 0.000000e+00 : f32
    %7 = vector.broadcast %cst_5 : f32 to vector<8x128xf32>
    %8 = arith.maximumf %6, %7 : vector<8x128xf32>
    %9 = arith.truncf %8 : vector<8x128xf32> to vector<8x128xbf16>
    %c0_6 = arith.constant 0 : index
    %c0_7 = arith.constant 0 : index
    %10 = vector.load %arg4[%c0_6, %c0_7] : memref<128x16xbf16, #tpu.memory_space<vmem>>, vector<128x16xbf16>
    %cst_8 = arith.constant dense<0.000000e+00> : vector<8x16xf32>
    %11 = tpu.matmul %9, %10, %cst_8 {dimension_numbers = #tpu.dot_dimension_numbers<[1], [0], [0], [1], [0, 0, 1, 1], [], []>} : vector<8x128xbf16>, vector<128x16xbf16>, vector<8x16xf32> -> vector<8x16xf32>
    %c0_9 = arith.constant 0 : index
    %c0_10 = arith.constant 0 : index
    %12 = vector.load %arg5[%c0_9, %c0_10] : memref<1x16xf32, #tpu.memory_space<vmem>>, vector<1x16xf32>
    %13 = vector.broadcast %12 : vector<1x16xf32> to vector<8x16xf32>
    %14 = arith.addf %11, %13 : vector<8x16xf32>
    %c0_11 = arith.constant 0 : index
    %c0_12 = arith.constant 0 : index
    %15 = vector.load %arg6[%c0_11, %c0_12] : memref<8x16xf32, #tpu.memory_space<vmem>>, vector<8x16xf32>
    tpu.vector_store %arg6[%c0_11, %c0_12], %14 {strides = array<i32>} : memref<8x16xf32, #tpu.memory_space<vmem>>, vector<8x16xf32>,
    return
  }
  func.func @transform_0(%arg0: i32) -> (i32, i32) {
    %c0_i32 = arith.constant 0 : i32
    %c0_i32_0 = arith.constant 0 : i32
    return %arg0, %c0_i32 : i32, i32
  }
  func.func @transform_1(%arg0: i32) -> (i32, i32) {
    %c0_i32 = arith.constant 0 : i32
    %c0_i32_0 = arith.constant 0 : i32
    %c0_i32_1 = arith.constant 0 : i32
    return %c0_i32, %c0_i32_0 : i32, i32
  }
  func.func @transform_2(%arg0: i32) -> (i32, i32) {
    %c0_i32 = arith.constant 0 : i32
    %c0_i32_0 = arith.constant 0 : i32
    %c0_i32_1 = arith.constant 0 : i32
    return %c0_i32, %c0_i32_0 : i32, i32
  }
  func.func @transform_3(%arg0: i32) -> (i32, i32) {
    %c0_i32 = arith.constant 0 : i32
    %c0_i32_0 = arith.constant 0 : i32
    %c0_i32_1 = arith.constant 0 : i32
    return %c0_i32, %c0_i32_0 : i32, i32
  }
  func.func @transform_4(%arg0: i32) -> (i32, i32) {
    %c0_i32 = arith.constant 0 : i32
    %c0_i32_0 = arith.constant 0 : i32
    %c0_i32_1 = arith.constant 0 : i32
    return %c0_i32, %c0_i32_0 : i32, i32
  }
  func.func @transform_5(%arg0: i32) -> (i32, i32) {
    %c0_i32 = arith.constant 0 : i32
    %c0_i32_0 = arith.constant 0 : i32
    return %arg0, %c0_i32 : i32, i32
  }
}

</mosaic_0001>

<bundles_post_ra>
// kernel: tpu_custom_call.1
= control target key start
LH: loop header
LB: loop body
LE: loop exit
PB: predicated region body
PF: predicated region fallthrough
CT: control target
= control target key end

     0   :  { %v336_v1 = vmov 0.0   ;;  %vm337_vm0 = vmmov 0   ;;  %s426_s0 = inlined_call_operand.vmem [shape: f32[8,64], index: 0, kind: input, shape index: {}]   ;;  %s427_s1 = inlined_call_operand.vmem [shape: bf16[64,128], index: 1, kind: input, shape index: {}]   ;;  %s428_s2 = inlined_call_operand.vmem [shape: f32[1,128], index: 2, kind: input, shape index: {}]   ;;  %s429_s3 = inlined_call_operand.vmem [shape: bf16[128,16], index: 3, kind: input, shape index: {}]   ;;  %s430_s4 = inlined_call_operand.vmem [shape: f32[1,16], index: 4, kind: input, shape index: {}]   ;;  %s431_s5 = inlined_call_operand.hbm [shape: f32[8,16], index: 5, kind: output, shape index: {}]  }
   0x1   :  { %v300_v0 = vld [vmem:[%s427_s1] sm:$0xff]   ;;  %265 = vmatprep.subr.bf16.mxu0 %v336_v1  ;;  %277 = vmatprep.subr.bf16.mxu1 %v336_v1  ;;  %v301_v2 = vld [vmem:[%s427_s1 + $0x8] sm:$0xff]   ;;  %v302_v4 = vld [vmem:[%s427_s1 + $0x10] sm:$0xff]  }
   0x2   :  { %266 = vmatpush3.bf16.msra.mxu0 %v300_v0  ;;  %273 = vmatprep.mubr.msk.bf16.mxu0 %vm337_vm0, %v336_v1  ;;  %v304_v3 = vld [vmem:[%s429_s3] sm:$0xff]   ;;  %v305_v5 = vld [vmem:[%s429_s3 + $0x8] sm:$0xff]   ;;  %v303_v6 = vld [vmem:[%s427_s1 + $0x18] sm:$0xff]  }
   0x3   :  { %267 = vmatprep.subr.bf16.mxu0 %v336_v1  ;;  %293 = vmatprep.mubr.msk.bf16.mxu1 %vm337_vm0, %v336_v1  ;;  %v22_v7 = vld [vmem:[%s426_s0] sm:$0xff]  ;;  %v306_v8 = vld [vmem:[%s429_s3 + $0x10] sm:$0xff]  }
   0x4   :  { %278 = vmatpush3.bf16.msra.mxu1 %v304_v3 }
   0x5   :  { %279 = vmatprep.subr.bf16.mxu1 %v336_v1 }
   0x6   :  { %268 = vmatpush3.bf16.msra.mxu0 %v301_v2 }
   0x7   :  { %269 = vmatprep.subr.bf16.mxu0 %v336_v1 }
   0x8   :  { %280 = vmatpush3.bf16.msra.mxu1 %v305_v5 }
   0x9   :  { %281 = vmatprep.subr.bf16.mxu1 %v336_v1 }
   0xa   :  { %270 = vmatpush3.bf16.msra.mxu0 %v302_v4 }
   0xb   :  { %271 = vmatprep.subr.bf16.mxu0 %v336_v1 }
   0xc   :  { %10 = vsyncpa [#allocation3], 0  ;;  %v23_v9 = vpack.c.bf16 %v22_v7, %v22_v7  ;;  %vm63_vm1 = vcmask 523264   ;;  %282 = vmatpush3.bf16.msra.mxu1 %v306_v8  ;;  %v307_v10 = vld [vmem:[%s429_s3 + $0x18] sm:$0xff]   ;;  %v308_v11 = vld [vmem:[%s429_s3 + $0x20] sm:$0xff]   ;;  %s338_s21 = smov [#allocation2]  }
   0xd   :  { %283 = vmatprep.subr.bf16.mxu1 %v336_v1  ;;  %v309_v12 = vld [vmem:[%s429_s3 + $0x28] sm:$0xff]   ;;  %v310_v13 = vld [vmem:[%s429_s3 + $0x30] sm:$0xff]   ;;  %v311_v14 = vld [vmem:[%s429_s3 + $0x38] sm:$0xff]   ;;  %s228_s22 = sshll.u32 %s338_s21, 4  ;;  %vm220_vm2 = vcmask 130048   ;;  %s229_s22 = int_to_ptr.vmem [resolvable:$true] %s228_s22 }
   0xe   :  { %272 = vmatpush3.bf16.msra.mxu0 %v303_v6  ;;  %v236_v15 = vld [vmem:[%s428_s2] ss:$0 sm:$0xff]  ;;  %s312_s2 = scalar_lea.vmem %s229_s22, 128  ;;  %p317_p1 = scmp.lt.s32.totalorder %s229_s22, %s229_s22 }
   0xf   :  { %v242_v23 = vld [vmem:[%s430_s4] ss:$0 sm:$0xff]  ;;  %p313_p0 = scmp.ne.s32.totalorder %s229_s22, %s312_s2  ;;  %p318_p2 = scmp.lt.s32.totalorder %s312_s2, %s312_s2 }
  0x10   :  { %284 = vmatpush3.bf16.msra.mxu1 %v307_v10 }
  0x11   :  { %274 = vmatmul.mubr.msk.bf16.vlgmr.msra.gmra.mrb[0].mxu0 %vm63_vm1, %v23_v9  ;;  %285 = vmatprep.subr.bf16.mxu1 %v336_v1  ;;  %p319_p3 = por %p318_p2, %p317_p1 }
  0x13   :  { %p320_p4 = pnand %p319_p3, %p313_p0 }
  0x14   :  { %286 = vmatpush3.bf16.msra.mxu1 %v308_v11 }
  0x15   :  { %287 = vmatprep.subr.bf16.mxu1 %v336_v1 }
  0x18   :  { %288 = vmatpush3.bf16.msra.mxu1 %v309_v12 }
  0x19   :  { %289 = vmatprep.subr.bf16.mxu1 %v336_v1 }
  0x1c   :  { %290 = vmatpush3.bf16.msra.mxu1 %v310_v13 }
  0x1d   :  { %291 = vmatprep.subr.bf16.mxu1 %v336_v1 }
  0x20   :  { %292 = vmatpush3.bf16.msra.mxu1 %v311_v14 }
  0xe4   :  { %v101_v16 = vpop.f32.mrb[0].mxu0 }
  0xe5   :  { %v102_v17 = vadd.f32 %v236_v15, %v101_v16  ;;  %v275_v18 = vpop.f32.mrb[1].mxu0 }
  0xe6   :  { %v104_v19 = vpop.f32.mrb[2].mxu0 }
  0xe7   :  { %v107_v20 = vmax.f32 %v102_v17, 0.0  ;;  %v276_v21 = vpop.f32.mrb[3].mxu0 }
  0xe9   :  { %v108_v22 = vpack.c.bf16 %v107_v20, %v107_v20 }
  0xeb   :  { %294 = vmatmul.mubr.bf16.vlgmr.msra.gmra.mrb[0].mxu1 %v108_v22 }
 0x1be   :  { %v214_v24 = vpop.f32.mrb[0].mxu1 }
 0x1bf   :  { %v215_v25 = vadd.f32 %v242_v23, %v214_v24  ;;  %v295_v26 = vpop.f32.mrb[1].mxu1 }
 0x1c0   :  { %v217_v27 = vpop.f32.mrb[2].mxu1 }
 0x1c1   :  { %v296_v28 = vpop.f32.mrb[3].mxu1  ;;  %221 = vst.msk [vmem:[#allocation2] sm:$0xff] %vm220_vm2, %v215_v25 }
 0x1c2   :  { %323 = shalt.err (!%p320_p4)
}
 0x1c3   :  { %s324_s4 = scalar_lea.hbm %s431_s5, 128 }
 0x1c4   :  { %p325_p5 = scmp.ne.s32.totalorder %s431_s5, %s324_s4  ;;  %p328_p6 = scmp.lt.u32.totalorder %s324_s4, %s431_s5 }
 0x1c6   :  { %p330_p7 = pnand %p328_p6, %p325_p5 }
 0x1c8   :  { %333 = shalt.err (!%p330_p7)
}
 0x1c9   :  { %231 = dma.vmem_to_hbm [thread:$0]  %s229_s22, 128, %s431_s5, [#allocation3]  }
 0x1ca   :  { %334 = dma.done.wait [#allocation3], 128  }
 0x1cb   :  { %335 = vsyncadd [#allocation3], 4294967168 }
 0x1cc   :  { %235 = vsyncpa [#allocation3], 1 }

</bundles_post_ra>
